<compile_context>
chip_gen: v6e
topology: v6e:2x2x1
jax: 0.10.0
libtpu: 0.0.40
codegen_flags: <defaults>
</compile_context>

<pallas_src>
import functools
import math

import jax
import jax.numpy as jnp
from jax.experimental import pallas as pl
from jax.experimental.pallas import tpu as pltpu


_TILE_CANDIDATES = (8192, 4096, 2048, 1024, 512, 256, 128)


def _vmem_capacity_bytes():
    """Per-core VMEM capacity; conservative (v7x-class, 64 MiB) fallback."""
    try:
        return int(pltpu.get_tpu_info().vmem_capacity_bytes)
    except Exception:
        return 64 << 20


def _choose_tile(hw, bytes_per_lane_col, vmem_cap, min_steps=1):
    """Pick a spatial (lane-axis) tile.

    bytes_per_lane_col: VMEM bytes consumed per unit of tile width by all
    double-buffered streamed blocks (inputs + outputs) of the kernel.
    """
    budget = max(int(vmem_cap * 0.30), 128 * bytes_per_lane_col)
    # Whole spatial extent as one full-dim block when it fits (single DMA/step).
    if hw <= 128 or (hw * bytes_per_lane_col <= budget and min_steps <= 1):
        return hw
    tile = 128
    for t in _TILE_CANDIDATES:
        if t <= hw and t * bytes_per_lane_col <= budget:
            tile = t
            break
    # Keep at least `min_steps` spatial grid steps (megacore balance on v7x).
    while tile > 128 and pl.cdiv(hw, tile) < min_steps:
        tile //= 2
    return tile


def _vmem_limit(tile, bytes_per_lane_col, vmem_cap):
    need = tile * bytes_per_lane_col + (8 << 20)          # + headroom
    return int(min(max(need, 32 << 20), int(vmem_cap * 0.85)))


# ----------------------------------------------------------------------------
# Kernel 1: global average pool (sum) over the spatial axis.
# x: (N, C, HW) -> sums: (N, C, 1).  Ragged tail lanes are masked to zero.
# ----------------------------------------------------------------------------
def _pool_kernel(x_ref, o_ref, *, hw, tile, ragged):
    j = pl.program_id(1)

    @pl.when(j == 0)
    def _():
        o_ref[...] = jnp.zeros_like(o_ref)

    def accum(x):
        o_ref[...] += jnp.sum(x.astype(jnp.float32), axis=2, keepdims=True)

    if ragged:
        last = pl.num_programs(1) - 1

        @pl.when(j != last)
        def _():
            accum(x_ref[...])

        @pl.when(j == last)
        def _():
            x = x_ref[...]
            lane = jax.lax.broadcasted_iota(jnp.int32, x.shape, 2) + j * tile
            accum(jnp.where(lane < hw, x, jnp.zeros_like(x)))
    else:
        accum(x_ref[...])


def _global_avg_pool(x3, tile, vmem_lim):
    n, c, hw = x3.shape
    ragged = (hw % tile) != 0
    kernel = functools.partial(_pool_kernel, hw=hw, tile=tile, ragged=ragged)
    return pl.pallas_call(
        kernel,
        out_shape=jax.ShapeDtypeStruct((n, c, 1), jnp.float32),
        grid_spec=pltpu.PrefetchScalarGridSpec(
            num_scalar_prefetch=0,
            grid=(n, pl.cdiv(hw, tile)),
            in_specs=[pl.BlockSpec((1, c, tile), lambda b, j: (b, 0, j))],
            out_specs=pl.BlockSpec((1, c, 1), lambda b, j: (b, 0, 0)),
        ),
        compiler_params=pltpu.CompilerParams(
            dimension_semantics=("parallel", "arbitrary"),
            vmem_limit_bytes=vmem_lim),
    )(x3)


# ----------------------------------------------------------------------------
# Kernel 2: fused spatial-SE + channel-SE application (+ combine / concat).
#   x: (1, C, TM)   s: (1, C, 1) sigmoid'ed channel gate   w: (1, C, 1) 1x1 conv
#   spatial gate a[hw] = sigmoid(sum_c x[c,hw] * w[c])     (sublane reduce)
#   concat=False: o = x * ((s + 2)/2 + a/2)
#   concat=True : o[:, :C] = x*(s+1) ; o[:, C:] = x*(a+1)  (concat in-kernel)
# ----------------------------------------------------------------------------
def _scse_kernel(x_ref, s_ref, w_ref, o_ref, *, concat):
    x = x_ref[...].astype(jnp.float32)                 # (1, C, TM)
    s = s_ref[...]                                      # (1, C, 1)
    w = w_ref[...]                                      # (1, C, 1)
    z = jnp.sum(x * w, axis=1, keepdims=True)           # (1, 1, TM) spatial logits
    a = pl.reciprocal(1.0 + jnp.exp(-z), approx=True)   # sigmoid; divide on the EUP
    if concat:
        # NOTE: fastest when C % 8 == 0 (second half-block write starts on a
        # sublane-tile boundary); other C are still correct, just masked stores.
        c = x_ref.shape[1]
        o_ref[:, :c, :] = (x * (s + 1.0)).astype(o_ref.dtype)   # chn_se
        o_ref[:, c:, :] = (x * (a + 1.0)).astype(o_ref.dtype)   # spa_se
    else:
        gate = (s + 2.0) * 0.5 + a * 0.5                 # tiny slabs, 1 bcast add
        o_ref[...] = (x * gate).astype(o_ref.dtype)


def _scse_apply(x3, s, w_spa, tile, concat, vmem_lim):
    n, c, hw = x3.shape
    c_out = 2 * c if concat else c
    kernel = functools.partial(_scse_kernel, concat=concat)
    return pl.pallas_call(
        kernel,
        out_shape=jax.ShapeDtypeStruct((n, c_out, hw), x3.dtype),
        grid_spec=pltpu.PrefetchScalarGridSpec(
            num_scalar_prefetch=0,
            grid=(n, pl.cdiv(hw, tile)),
            in_specs=[
                pl.BlockSpec((1, c, tile), lambda b, j: (b, 0, j)),
                pl.BlockSpec((1, c, 1), lambda b, j: (b, 0, 0)),
                pl.BlockSpec((1, c, 1), lambda b, j: (0, 0, 0)),
            ],
            out_specs=pl.BlockSpec((1, c_out, tile), lambda b, j: (b, 0, j)),
        ),
        compiler_params=pltpu.CompilerParams(
            dimension_semantics=("parallel", "parallel"),
            vmem_limit_bytes=vmem_lim),
    )(x3, s, w_spa)


# ----------------------------------------------------------------------------
# Full module forward (matches SCSEModule2.forward)
# ----------------------------------------------------------------------------
@functools.partial(jax.jit, static_argnames=("concat", "spatial_tile"))
def scse_module2(x_nchw, params, *, concat=False, spatial_tile=None):
    n, c, h, w = x_nchw.shape
    hw = h * w
    c_out = 2 * c if concat else c
    itemsize = jnp.dtype(x_nchw.dtype).itemsize

    x3 = x_nchw.reshape(n, c, hw)          # free view: HW on the 128-lane axis

    vmem_cap = _vmem_capacity_bytes()
    pool_cols = 2 * c * itemsize                          # double-buffered x in
    apply_cols = 2 * c * itemsize + 2 * c_out * itemsize  # x in + out, both 2-buf
    if spatial_tile is None:
        pool_tile = _choose_tile(hw, pool_cols, vmem_cap)
        apply_tile = _choose_tile(hw, apply_cols, vmem_cap,
                                  min_steps=2 if n < 2 else 1)
    else:
        pool_tile = apply_tile = min(int(spatial_tile), hw)

    # ---- channel squeeze / excite: tiny matmuls -> plain JAX (VPU) ---------
    pooled = _global_avg_pool(x3, pool_tile,
                              _vmem_limit(pool_tile, pool_cols, vmem_cap))
    pooled = pooled[:, :, 0].astype(jnp.float32) * (1.0 / float(hw))  # fold 1/HW
    hid = jax.nn.relu(pooled @ params['fc1_w'] + params['fc1_b'])
    gate = jax.nn.sigmoid(hid @ params['fc2_w'] + params['fc2_b'])    # (N, C)

    # ---- fused spatial-SE + gate application + combine / concat ------------
    s = gate.astype(jnp.float32)[:, :, None]                          # (N, C, 1)
    w_spa = params['spa_w'].astype(jnp.float32).reshape(1, c, 1)      # (1, C, 1)
    out3 = _scse_apply(x3, s, w_spa, apply_tile, concat,
                       _vmem_limit(apply_tile, apply_cols, vmem_cap))

    return out3.reshape(n, c_out, h, w)


# ----------------------------------------------------------------------------
# Pure-JAX reference (for correctness checking only)
# ----------------------------------------------------------------------------
def reference_scse(x, params, concat=False):
    pooled = jnp.mean(x, axis=(2, 3))                                 # (N, C)
    hid = jax.nn.relu(pooled @ params['fc1_w'] + params['fc1_b'])
    gate = jax.nn.sigmoid(hid @ params['fc2_w'] + params['fc2_b'])
    chn = x * gate[:, :, None, None] + x
    a = jax.nn.sigmoid(jnp.einsum('nchw,c->nhw', x, params['spa_w']))
    spa = x * a[:, None, :, :] + x
    if concat:
        return jnp.concatenate([chn, spa], axis=1)
    return (chn + spa) * 0.5


# ----------------------------------------------------------------------------
# Deterministic synthetic parameters (PyTorch Conv2d-style uniform init).
# Spatial-SE 1x1 conv has NO bias (matches nn.Conv2d(..., bias=False) in spec).
# ----------------------------------------------------------------------------
def init_params(key, channels, reduction=16):
    cr = max(channels // reduction, 1)
    k1, k2, k3, k4, k5 = jax.random.split(key, 5)

    def uni(k, shape, fan_in):
        bound = 1.0 / math.sqrt(fan_in)
        return jax.random.uniform(k, shape, jnp.float32, -bound, bound)

    return {
        'fc1_w': uni(k1, (channels, cr), channels),     # 1x1 conv C -> C/r
        'fc1_b': uni(k2, (cr,), channels),
        'fc2_w': uni(k3, (cr, channels), cr),           # 1x1 conv C/r -> C
        'fc2_b': uni(k4, (channels,), cr),
        'spa_w': uni(k5, (channels,), channels),        # 1x1 conv C -> 1, bias=False
    }


# ----------------------------------------------------------------------------
if __name__ == "__main__":
    # Case 1: lane-aligned spatial extent (H*W % 128 == 0)
    N, C, H, W = 2, 64, 16, 16
    kx, kp = jax.random.split(jax.random.PRNGKey(0))
    x = jax.random.normal(kx, (N, C, H, W), dtype=jnp.float32)
    params = init_params(kp, C, reduction=16)

    out = jax.block_until_ready(scse_module2(x, params, concat=False))
    assert out.shape == (N, C, H, W), out.shape
    assert bool(jnp.all(jnp.isfinite(out)))
    ref = reference_scse(x, params, concat=False)
    assert bool(jnp.allclose(out, ref, atol=2e-3, rtol=2e-3))

    out_c = jax.block_until_ready(scse_module2(x, params, concat=True))
    assert out_c.shape == (N, 2 * C, H, W), out_c.shape
    ref_c = reference_scse(x, params, concat=True)
    assert bool(jnp.allclose(out_c, ref_c, atol=2e-3, rtol=2e-3))

    # Case 2: ragged spatial extent (H*W = 143), forced 128-lane tile so the
    # masked-tail pool path and Pallas' masked output writeback are exercised.
    N2, C2, H2, W2 = 2, 32, 13, 11
    kx2, kp2 = jax.random.split(jax.random.PRNGKey(1))
    x2 = jax.random.normal(kx2, (N2, C2, H2, W2), dtype=jnp.float32)
    params2 = init_params(kp2, C2, reduction=16)
    out2 = jax.block_until_ready(
        scse_module2(x2, params2, concat=False, spatial_tile=128))
    assert out2.shape == (N2, C2, H2, W2), out2.shape
    ref2 = reference_scse(x2, params2, concat=False)
    assert bool(jnp.allclose(out2, ref2, atol=2e-3, rtol=2e-3))

    print("KERNEL_OK")
</pallas_src>

<mosaic_0001>
module attributes {stable_mosaic.version = 11 : i64} {
  func.func @_pool_kernel(%arg0: i32, %arg1: i32, %arg2: memref<1x64x256xf32, #tpu.memory_space<vmem>>, %arg3: memref<1x64x1xf32, #tpu.memory_space<vmem>>) attributes {dimension_semantics = [#tpu.dimension_semantics<parallel>, #tpu.dimension_semantics<arbitrary>], iteration_bounds = array<i64: 2, 1>, scalar_prefetch = 0 : i64, scratch_operands = 0 : i64, tpu.core_type = #tpu.core_type<tc>, window_params = [{transform_indices = @transform_0, window_bounds = array<i64: 1, 64, 256>}, {transform_indices = @transform_1, window_bounds = array<i64: 1, 64, 1>}]} {
    %c0_i32 = arith.constant 0 : i32
    %0 = arith.cmpi eq, %arg1, %c0_i32 : i32
    %1 = arith.extui %0 : i1 to i32
    %c0_i32_0 = arith.constant 0 : i32
    %2 = arith.cmpi ne, %1, %c0_i32_0 : i32
    scf.if %2 {
      %cst_9 = arith.constant 0.000000e+00 : f32
      %9 = vector.broadcast %cst_9 : f32 to vector<1x64x1xf32>
      %c0_10 = arith.constant 0 : index
      %c0_11 = arith.constant 0 : index
      %c0_12 = arith.constant 0 : index
      %10 = vector.load %arg3[%c0_10, %c0_11, %c0_12] : memref<1x64x1xf32, #tpu.memory_space<vmem>>, vector<1x64x1xf32>
      tpu.vector_store %arg3[%c0_10, %c0_11, %c0_12], %9 {strides = array<i32>} : memref<1x64x1xf32, #tpu.memory_space<vmem>>, vector<1x64x1xf32>,
    } else {
    }
    %c0 = arith.constant 0 : index
    %c0_1 = arith.constant 0 : index
    %c0_2 = arith.constant 0 : index
    %3 = vector.load %arg2[%c0, %c0_1, %c0_2] : memref<1x64x256xf32, #tpu.memory_space<vmem>>, vector<1x64x256xf32>
    %c0_3 = arith.constant 0 : index
    %c0_4 = arith.constant 0 : index
    %c0_5 = arith.constant 0 : index
    %4 = vector.load %arg3[%c0_3, %c0_4, %c0_5] : memref<1x64x1xf32, #tpu.memory_space<vmem>>, vector<1x64x1xf32>
    %cst = arith.constant dense<0.000000e+00> : vector<1x64xf32>
    %5 = vector.multi_reduction <add>, %3, %cst [2] : vector<1x64x256xf32> to vector<1x64xf32>
    %6 = vector.shape_cast %5 : vector<1x64xf32> to vector<1x64x1xf32>
    %7 = arith.addf %4, %6 : vector<1x64x1xf32>
    %c0_6 = arith.constant 0 : index
    %c0_7 = arith.constant 0 : index
    %c0_8 = arith.constant 0 : index
    %8 = vector.load %arg3[%c0_6, %c0_7, %c0_8] : memref<1x64x1xf32, #tpu.memory_space<vmem>>, vector<1x64x1xf32>
    tpu.vector_store %arg3[%c0_6, %c0_7, %c0_8], %7 {strides = array<i32>} : memref<1x64x1xf32, #tpu.memory_space<vmem>>, vector<1x64x1xf32>,
    return
  }
  func.func @transform_0(%arg0: i32, %arg1: i32) -> (i32, i32, i32) {
    %c0_i32 = arith.constant 0 : i32
    %c0_i32_0 = arith.constant 0 : i32
    return %arg0, %c0_i32, %arg1 : i32, i32, i32
  }
  func.func @transform_1(%arg0: i32, %arg1: i32) -> (i32, i32, i32) {
    %c0_i32 = arith.constant 0 : i32
    %c0_i32_0 = arith.constant 0 : i32
    %c0_i32_1 = arith.constant 0 : i32
    return %arg0, %c0_i32, %c0_i32_0 : i32, i32, i32
  }
}

module attributes {stable_mosaic.version = 11 : i64} {
  func.func @_scse_kernel(%arg0: i32, %arg1: i32, %arg2: memref<1x64x256xf32, #tpu.memory_space<vmem>>, %arg3: memref<1x64x1xf32, #tpu.memory_space<vmem>>, %arg4: memref<1x64x1xf32, #tpu.memory_space<vmem>>, %arg5: memref<1x64x256xf32, #tpu.memory_space<vmem>>) attributes {dimension_semantics = [#tpu.dimension_semantics<parallel>, #tpu.dimension_semantics<parallel>], iteration_bounds = array<i64: 2, 1>, scalar_prefetch = 0 : i64, scratch_operands = 0 : i64, tpu.core_type = #tpu.core_type<tc>, window_params = [{transform_indices = @transform_0, window_bounds = array<i64: 1, 64, 256>}, {transform_indices = @transform_1, window_bounds = array<i64: 1, 64, 1>}, {pipeline_mode = #tpu.pipeline_mode<synchronous>, transform_indices = @transform_2, window_bounds = array<i64: 1, 64, 1>}, {transform_indices = @transform_3, window_bounds = array<i64: 1, 64, 256>}]} {
    %c0 = arith.constant 0 : index
    %c0_0 = arith.constant 0 : index
    %c0_1 = arith.constant 0 : index
    %0 = vector.load %arg2[%c0, %c0_0, %c0_1] : memref<1x64x256xf32, #tpu.memory_space<vmem>>, vector<1x64x256xf32>
    %c0_2 = arith.constant 0 : index
    %c0_3 = arith.constant 0 : index
    %c0_4 = arith.constant 0 : index
    %1 = vector.load %arg3[%c0_2, %c0_3, %c0_4] : memref<1x64x1xf32, #tpu.memory_space<vmem>>, vector<1x64x1xf32>
    %c0_5 = arith.constant 0 : index
    %c0_6 = arith.constant 0 : index
    %c0_7 = arith.constant 0 : index
    %2 = vector.load %arg4[%c0_5, %c0_6, %c0_7] : memref<1x64x1xf32, #tpu.memory_space<vmem>>, vector<1x64x1xf32>
    %3 = vector.broadcast %2 : vector<1x64x1xf32> to vector<1x64x256xf32>
    %4 = arith.mulf %0, %3 : vector<1x64x256xf32>
    %cst = arith.constant dense<0.000000e+00> : vector<1x256xf32>
    %5 = vector.multi_reduction <add>, %4, %cst [1] : vector<1x64x256xf32> to vector<1x256xf32>
    %6 = vector.shape_cast %5 : vector<1x256xf32> to vector<1x1x256xf32>
    %cst_8 = arith.constant 0.000000e+00 : f32
    %7 = vector.broadcast %cst_8 : f32 to vector<1x1x256xf32>
    %8 = arith.subf %7, %6 : vector<1x1x256xf32>
    %9 = math.exp %8 : vector<1x1x256xf32>
    %cst_9 = arith.constant 1.000000e+00 : f32
    %10 = vector.broadcast %cst_9 : f32 to vector<1x1x256xf32>
    %11 = arith.addf %10, %9 : vector<1x1x256xf32>
    %12 = tpu.reciprocal %11 {approx = true} : vector<1x1x256xf32> -> vector<1x1x256xf32>
    %cst_10 = arith.constant 2.000000e+00 : f32
    %13 = vector.broadcast %cst_10 : f32 to vector<1x64x1xf32>
    %14 = arith.addf %1, %13 : vector<1x64x1xf32>
    %cst_11 = arith.constant 5.000000e-01 : f32
    %15 = vector.broadcast %cst_11 : f32 to vector<1x64x1xf32>
    %16 = arith.mulf %14, %15 : vector<1x64x1xf32>
    %cst_12 = arith.constant 5.000000e-01 : f32
    %17 = vector.broadcast %cst_12 : f32 to vector<1x1x256xf32>
    %18 = arith.mulf %12, %17 : vector<1x1x256xf32>
    %19 = vector.broadcast %16 : vector<1x64x1xf32> to vector<1x64x256xf32>
    %20 = vector.broadcast %18 : vector<1x1x256xf32> to vector<1x64x256xf32>
    %21 = arith.addf %19, %20 : vector<1x64x256xf32>
    %22 = arith.mulf %0, %21 : vector<1x64x256xf32>
    %c0_13 = arith.constant 0 : index
    %c0_14 = arith.constant 0 : index
    %c0_15 = arith.constant 0 : index
    %23 = vector.load %arg5[%c0_13, %c0_14, %c0_15] : memref<1x64x256xf32, #tpu.memory_space<vmem>>, vector<1x64x256xf32>
    tpu.vector_store %arg5[%c0_13, %c0_14, %c0_15], %22 {strides = array<i32>} : memref<1x64x256xf32, #tpu.memory_space<vmem>>, vector<1x64x256xf32>,
    return
  }
  func.func @transform_0(%arg0: i32, %arg1: i32) -> (i32, i32, i32) {
    %c0_i32 = arith.constant 0 : i32
    %c0_i32_0 = arith.constant 0 : i32
    return %arg0, %c0_i32, %arg1 : i32, i32, i32
  }
  func.func @transform_1(%arg0: i32, %arg1: i32) -> (i32, i32, i32) {
    %c0_i32 = arith.constant 0 : i32
    %c0_i32_0 = arith.constant 0 : i32
    %c0_i32_1 = arith.constant 0 : i32
    return %arg0, %c0_i32, %c0_i32_0 : i32, i32, i32
  }
  func.func @transform_2(%arg0: i32, %arg1: i32) -> (i32, i32, i32) {
    %c0_i32 = arith.constant 0 : i32
    %c0_i32_0 = arith.constant 0 : i32
    %c0_i32_1 = arith.constant 0 : i32
    %c0_i32_2 = arith.constant 0 : i32
    return %c0_i32, %c0_i32_0, %c0_i32_1 : i32, i32, i32
  }
  func.func @transform_3(%arg0: i32, %arg1: i32) -> (i32, i32, i32) {
    %c0_i32 = arith.constant 0 : i32
    %c0_i32_0 = arith.constant 0 : i32
    return %arg0, %c0_i32, %arg1 : i32, i32, i32
  }
}

</mosaic_0001>

<bundles_post_ra>
// kernel: scse_module2.2
= control target key start
LH: loop header
LB: loop body
LE: loop exit
PB: predicated region body
PF: predicated region fallthrough
CT: control target
= control target key end

     0   :  { %s365_s6 = smov 0   ;;  %s367_s7 = smov 0   ;;  %s458_s0 = inlined_call_operand.vmem [shape: f32[2,64,256], index: 0, kind: input, shape index: {}]   ;;  %s459_s1 = inlined_call_operand.vmem [shape: f32[2,64,1], index: 1, kind: output, shape index: {}]  }
   0x1   :  { %s369_s8 = smov 0  }
   0x2 LB: > { %s23_s9 = sadd.s32 1, %s348_s7  ;;  %p296_p0 = scmp.ge.s32.totalorder %s352_s8, 1  ;;  %s352_s8 = sphi %s369_s8, %s11_s8   ;;  %s348_s7 = sphi %s367_s7, %s461_s7   ;;  %s344_s6 = sphi %s365_s6, %s460_s6  }
   0x3   : > { %p25_p1 = scmp.ge.s32.totalorder %s23_s9, 2  ;;  %p106_p2 = scmp.lt.s32.totalorder %s352_s8, 3 }
   0x5   : > { %s463_s9 = smov (%p25_p1, %s23_s9), 0  ;;  %p107_p3 = pnand %p296_p0, %p106_p2 }
   0x6   : > { %p131_p4 = scmp.lt.s32.totalorder (!%p107_p3), %s344_s6, 1 }
   0x7   : > { %110 = sbr.rel (%p107_p3) target bundleno = 172 (0xac), region = 24 }
   0xc   : > { %s465_s6 = smov (!%p131_p4, %s344_s6), 1  ;;  %vm149_vm0 = vcmask 7168   ;;  %v354_v3 = vmov 0.0  }
   0xd   : > { %s303_s10 = sshll.u32 %s465_s6, 7  ;;  %s304_s11 = sshll.u32 %s465_s6, 6 }
   0xe   : > { %s386_s14 = scalar_lea.vmem %s458_s0, %s303_s10  ;;  %s391_s17 = scalar_lea.vmem %s459_s1, %s304_s11 }
   0xf   : > { %v162_v0 = vld [vmem:[%s386_s14 + $0x20] sm:$0xff]  ;;  %v163_v1 = vld [vmem:[%s386_s14 + $0x28] sm:$0xff]  ;;  %152 = vst.msk [vmem:[%s391_s17 + $0x10] sm:$0xff] %vm149_vm0, %v354_v3  ;;  %150 = vst.msk [vmem:[%s391_s17] sm:$0xff] %vm149_vm0, %v354_v3 }
  0x10   : > { %v158_v2 = vld [vmem:[%s386_s14] sm:$0xff]  ;;  %151 = vst.msk [vmem:[%s391_s17 + $0x8] sm:$0xff] %vm149_vm0, %v354_v3  ;;  %153 = vst.msk [vmem:[%s391_s17 + $0x18] sm:$0xff] %vm149_vm0, %v354_v3  ;;  %v188_v4 = vadd.f32 %v163_v1, %v162_v0  ;;  %v159_v5 = vld [vmem:[%s386_s14 + $0x8] sm:$0xff] }
  0x11   : > { %154 = vst.msk [vmem:[%s391_s17 + $0x20] sm:$0xff] %vm149_vm0, %v354_v3  ;;  %155 = vst.msk [vmem:[%s391_s17 + $0x28] sm:$0xff] %vm149_vm0, %v354_v3  ;;  %v164_v6 = vld [vmem:[%s386_s14 + $0x30] sm:$0xff]  ;;  %v165_v7 = vld [vmem:[%s386_s14 + $0x38] sm:$0xff]  ;;  %v182_v8 = vadd.f32 %v159_v5, %v158_v2 }
  0x12   : > { %156 = vst.msk [vmem:[%s391_s17 + $0x30] sm:$0xff] %vm149_vm0, %v354_v3  ;;  %157 = vst.msk [vmem:[%s391_s17 + $0x38] sm:$0xff] %vm149_vm0, %v354_v3  ;;  %v160_v9 = vld [vmem:[%s386_s14 + $0x10] sm:$0xff]  ;;  %v161_v10 = vld [vmem:[%s386_s14 + $0x18] sm:$0xff]  ;;  %189 = vadd.xlane.f32.xlu1 %v188_v4  ;;  %v191_v11 = vadd.f32 %v165_v7, %v164_v6 }
  0x13   : > { %183 = vadd.xlane.f32.xlu0 %v182_v8  ;;  %v185_v12 = vadd.f32 %v161_v10, %v160_v9  ;;  %v168_v13 = vld [vmem:[%s386_s14 + $0x50] sm:$0xff]  ;;  %v169_v14 = vld [vmem:[%s386_s14 + $0x58] sm:$0xff]  ;;  %v166_v15 = vld [vmem:[%s386_s14 + $0x40] sm:$0xff] }
  0x14   : > { %v167_v16 = vld [vmem:[%s386_s14 + $0x48] sm:$0xff]  ;;  %v197_v17 = vadd.f32 %v169_v14, %v168_v13  ;;  %v172_v19 = vld [vmem:[%s386_s14 + $0x70] sm:$0xff]  ;;  %v173_v20 = vld [vmem:[%s386_s14 + $0x78] sm:$0xff] }
  0x15   : > { %v194_v18 = vadd.f32 %v167_v16, %v166_v15  ;;  %v170_v21 = vld [vmem:[%s386_s14 + $0x60] sm:$0xff]  ;;  %v171_v22 = vld [vmem:[%s386_s14 + $0x68] sm:$0xff]  ;;  %v203_v23 = vadd.f32 %v173_v20, %v172_v19 }
  0x16   : > { %192 = vadd.xlane.f32.xlu1 %v191_v11  ;;  %v200_v24 = vadd.f32 %v171_v22, %v170_v21  ;;  %v176_v25 = vld [vmem:[%s391_s17 + $0x10] sm:$0xff]  ;;  %v174_v26 = vld [vmem:[%s391_s17] sm:$0xff] }
  0x17   : > { %186 = vadd.xlane.f32.xlu0 %v185_v12  ;;  %v177_v31 = vld [vmem:[%s391_s17 + $0x18] sm:$0xff]  ;;  %v175_v32 = vld [vmem:[%s391_s17 + $0x8] sm:$0xff] }
  0x18   : > { %v179_v37 = vld [vmem:[%s391_s17 + $0x28] sm:$0xff]  ;;  %v178_v38 = vld [vmem:[%s391_s17 + $0x20] sm:$0xff] }
  0x19   : > { %v181_v43 = vld [vmem:[%s391_s17 + $0x38] sm:$0xff]  ;;  %v180_v44 = vld [vmem:[%s391_s17 + $0x30] sm:$0xff] }
  0x1a   : > { %198 = vadd.xlane.f32.xlu1 %v197_v17 }
  0x1b   : > { %195 = vadd.xlane.f32.xlu0 %v194_v18 }
  0x1e   : > { %204 = vadd.xlane.f32.xlu1 %v203_v23 }
  0x1f   : > { %201 = vadd.xlane.f32.xlu0 %v200_v24 }
  0x9b   : > { %v190_v27 = vpop.xlane.xlu1 %189 }
  0x9c   : > { %v208_v28 = vadd.f32 %v190_v27, %v176_v25  ;;  %v184_v29 = vpop.xlane.xlu0 %183 }
  0x9d   : > { %v206_v30 = vadd.f32 %v184_v29, %v174_v26 }
  0x9e   : > { %217 = vst.msk [vmem:[%s391_s17 + $0x10] sm:$0xff] %vm149_vm0, %v208_v28 }
  0x9f   : > { %215 = vst.msk [vmem:[%s391_s17] sm:$0xff] %vm149_vm0, %v206_v30  ;;  %v193_v33 = vpop.xlane.xlu1 %192 }
  0xa0   : > { %v209_v34 = vadd.f32 %v193_v33, %v177_v31  ;;  %v187_v35 = vpop.xlane.xlu0 %186 }
  0xa1   : > { %v207_v36 = vadd.f32 %v187_v35, %v175_v32 }
  0xa2   : > { %218 = vst.msk [vmem:[%s391_s17 + $0x18] sm:$0xff] %vm149_vm0, %v209_v34 }
  0xa3   : > { %216 = vst.msk [vmem:[%s391_s17 + $0x8] sm:$0xff] %vm149_vm0, %v207_v36  ;;  %v199_v39 = vpop.xlane.xlu1 %198 }
  0xa4   : > { %v211_v40 = vadd.f32 %v199_v39, %v179_v37  ;;  %v196_v41 = vpop.xlane.xlu0 %195 }
  0xa5   : > { %v210_v42 = vadd.f32 %v196_v41, %v178_v38 }
  0xa6   : > { %220 = vst.msk [vmem:[%s391_s17 + $0x28] sm:$0xff] %vm149_vm0, %v211_v40 }
  0xa7   : > { %219 = vst.msk [vmem:[%s391_s17 + $0x20] sm:$0xff] %vm149_vm0, %v210_v42  ;;  %v205_v45 = vpop.xlane.xlu1 %204 }
  0xa8   : > { %v213_v46 = vadd.f32 %v205_v45, %v181_v43  ;;  %v202_v47 = vpop.xlane.xlu0 %201 }
  0xa9   : > { %v212_v48 = vadd.f32 %v202_v47, %v180_v44 }
  0xaa   : > { %222 = vst.msk [vmem:[%s391_s17 + $0x38] sm:$0xff] %vm149_vm0, %v213_v46 }
  0xab   : > { %221 = vst.msk [vmem:[%s391_s17 + $0x30] sm:$0xff] %vm149_vm0, %v212_v48 }
  0xac PF: > { %s11_s8 = sadd.s32 1, %s352_s8   ;;  %s460_s6 = smov %s348_s7 }
  0xad   : > { %p8_p5 = scmp.ge.s32.totalorder %s11_s8, 4   ;;  %s461_s7 = smov %s463_s9 }
  0xaf   :  { %10 = sbr.rel (!%p8_p5) target bundleno = 2 (0x2), region = 58 }

// kernel: scse_module2.3
= control target key start
LH: loop header
LB: loop body
LE: loop exit
PB: predicated region body
PF: predicated region fallthrough
CT: control target
= control target key end

     0   :  { %s655_s12 = smov 0   ;;  %s657_s13 = smov 0   ;;  %s823_s0 = inlined_call_operand.vmem [shape: f32[2,64,256], index: 0, kind: input, shape index: {}]   ;;  %s824_s1 = inlined_call_operand.vmem [shape: f32[2,64,1], index: 1, kind: input, shape index: {}]   ;;  %s825_s2 = inlined_call_operand.vmem [shape: f32[1,64,1], index: 2, kind: input, shape index: {}]   ;;  %s826_s3 = inlined_call_operand.vmem [shape: f32[2,64,256], index: 3, kind: output, shape index: {}]  }
   0x1   :  { %s659_s14 = smov 0  }
   0x2 LB: > { %s25_s15 = sadd.s32 1, %s628_s13  ;;  %p563_p0 = scmp.ge.s32.totalorder %s632_s14, 1  ;;  %s632_s14 = sphi %s659_s14, %s13_s14   ;;  %s628_s13 = sphi %s657_s13, %s828_s13   ;;  %s624_s12 = sphi %s655_s12, %s827_s12  }
   0x3   : > { %p27_p1 = scmp.ge.s32.totalorder %s25_s15, 2  ;;  %p168_p2 = scmp.lt.s32.totalorder %s632_s14, 3 }
   0x5   : > { %s830_s15 = smov (%p27_p1, %s25_s15), 0  ;;  %p169_p3 = pnand %p563_p0, %p168_p2 }
   0x6   : > { %p206_p4 = scmp.lt.s32.totalorder (!%p169_p3), %s624_s12, 1 }
   0x7   : > { %172 = sbr.rel (%p169_p3) target bundleno = 219 (0xdb), region = 32 }
   0xc   : > { %v256_v0 = vld [vmem:[%s825_s2 + $0x10] sm:$0xff]  ;;  %v254_v1 = vld [vmem:[%s825_s2] sm:$0xff]  ;;  %v634_v2 = vmov 0   ;;  %s832_s12 = smov (!%p206_p4, %s624_s12), 1  ;;  %v257_v3 = vld [vmem:[%s825_s2 + $0x18] sm:$0xff] }
   0xd   : > { %601 = vset.pattern.permute.xlu1 %v634_v2  ;;  %600 = vset.pattern.permute.xlu0 %v634_v2  ;;  %v255_v4 = vld [vmem:[%s825_s2 + $0x8] sm:$0xff]  ;;  %s573_s24 = sshll.u32 %s832_s12, 6  ;;  %v258_v6 = vld [vmem:[%s825_s2 + $0x20] sm:$0xff]  ;;  %v261_v9 = vld [vmem:[%s825_s2 + $0x38] sm:$0xff]  ;;  %s572_s9 = sshll.u32 %s832_s12, 7 }
   0xe   : > { %274 = vperm.xlu1 %601, %v256_v0   ;;  %264 = vperm.xlu0 %600, %v254_v1   ;;  %s219_s27 = scalar_lea.vmem %s824_s1, %s573_s24  ;;  %v259_v5 = vld [vmem:[%s825_s2 + $0x28] sm:$0xff]  ;;  %v260_v12 = vld [vmem:[%s825_s2 + $0x30] sm:$0xff]  ;;  %s709_s16 = scalar_lea.vmem %s823_s0, %s572_s9 }
   0xf   : > { %v247_v7 = vld [vmem:[%s219_s27 + $0x8] sm:$0xff]  ;;  %v246_v8 = vld [vmem:[%s219_s27] sm:$0xff]  ;;  %v249_v13 = vld [vmem:[%s219_s27 + $0x18] sm:$0xff]  ;;  %s780_s19 = scalar_lea.vmem %s826_s3, %s572_s9 }
  0x10   : > { %v355_v10 = vadd.f32 2.0, %v247_v7  ;;  %v354_v11 = vadd.f32 2.0, %v246_v8  ;;  %v248_v14 = vld [vmem:[%s219_s27 + $0x10] sm:$0xff]  ;;  %v357_v17 = vadd.f32 2.0, %v249_v13  ;;  %v251_v19 = vld [vmem:[%s219_s27 + $0x28] sm:$0xff]  ;;  %v250_v20 = vld [vmem:[%s219_s27 + $0x20] sm:$0xff] }
  0x11   : > { %v356_v18 = vadd.f32 2.0, %v248_v14  ;;  %v359_v23 = vadd.f32 2.0, %v251_v19  ;;  %v358_v24 = vadd.f32 2.0, %v250_v20  ;;  %v253_v25 = vld [vmem:[%s219_s27 + $0x38] sm:$0xff]  ;;  %v252_v26 = vld [vmem:[%s219_s27 + $0x30] sm:$0xff]  ;;  %v712_v35 = vld [vmem:[%s709_s16] sm:$0xff] }
  0x12   : > { %279 = vperm.xlu1 %601, %v257_v3   ;;  %269 = vperm.xlu0 %600, %v255_v4   ;;  %v363_v15 = vmul.f32 0.5, %v355_v10  ;;  %v362_v16 = vmul.f32 0.5, %v354_v11  ;;  %v365_v21 = vmul.f32 0.5, %v357_v17  ;;  %v361_v29 = vadd.f32 2.0, %v253_v25  ;;  %v715_v36 = vld [vmem:[%s709_s16 + $0x8] sm:$0xff]  ;;  %v718_v37 = vld [vmem:[%s709_s16 + $0x10] sm:$0xff] }
  0x13   : > { %v364_v22 = vmul.f32 0.5, %v356_v18  ;;  %v367_v27 = vmul.f32 0.5, %v359_v23  ;;  %v366_v28 = vmul.f32 0.5, %v358_v24  ;;  %v360_v30 = vadd.f32 2.0, %v252_v26  ;;  %v721_v38 = vld [vmem:[%s709_s16 + $0x18] sm:$0xff]  ;;  %v724_v39 = vld [vmem:[%s709_s16 + $0x20] sm:$0xff] }
  0x14   : > { %v369_v31 = vmul.f32 0.5, %v361_v29  ;;  %v727_v40 = vld [vmem:[%s709_s16 + $0x28] sm:$0xff]  ;;  %v734_v47 = vld [vmem:[%s709_s16 + $0x30] sm:$0xff]  ;;  %v737_v48 = vld [vmem:[%s709_s16 + $0x38] sm:$0xff] }
  0x15   : > { %v368_v32 = vmul.f32 0.5, %v360_v30  ;;  %v742_v55 = vld [vmem:[%s709_s16 + $0x40] sm:$0xff]  ;;  %v745_v56 = vld [vmem:[%s709_s16 + $0x48] sm:$0xff]  ;;  %v750_v61 = vld [vmem:[%s709_s16 + $0x50] sm:$0xff] }
  0x16   : > { %289 = vperm.xlu1 %601, %v259_v5   ;;  %284 = vperm.xlu0 %600, %v258_v6   ;;  %v753_v62 = vld [vmem:[%s709_s16 + $0x58] sm:$0xff]  ;;  %v758_v4 = vld [vmem:[%s709_s16 + $0x60] sm:$0xff]  ;;  %v761_v5 = vld [vmem:[%s709_s16 + $0x68] sm:$0xff] }
  0x17   : > { %v766_v11 = vld [vmem:[%s709_s16 + $0x70] sm:$0xff] }
  0x1a   : > { %299 = vperm.xlu1 %601, %v261_v9   ;;  %294 = vperm.xlu0 %600, %v260_v12   ;;  %v769_v12 = vld [vmem:[%s709_s16 + $0x78] sm:$0xff] }
  0x1e   : > { %379 = vperm.xlu1 %601, %v363_v15   ;;  %374 = vperm.xlu0 %600, %v362_v16  }
  0x22   : > { %389 = vperm.xlu1 %601, %v365_v21   ;;  %384 = vperm.xlu0 %600, %v364_v22  }
  0x26   : > { %399 = vperm.xlu1 %601, %v367_v27   ;;  %394 = vperm.xlu0 %600, %v366_v28  }
  0x2a   : > { %409 = vperm.xlu1 %601, %v369_v31   ;;  %404 = vperm.xlu0 %600, %v368_v32  }
  0x89   : > { %v275_v33 = vpop.permute.xlu1 %274  ;;  %v265_v34 = vpop.permute.xlu0 %264 }
  0x8a   : > { %v302_v43 = vmul.f32 %v265_v34, %v712_v35  ;;  %v303_v44 = vmul.f32 %v265_v34, %v715_v36  ;;  %v306_v49 = vmul.f32 %v275_v33, %v724_v39  ;;  %v307_v50 = vmul.f32 %v275_v33, %v727_v40 }
  0x8d   : > { %v280_v41 = vpop.permute.xlu1 %279  ;;  %v270_v42 = vpop.permute.xlu0 %269 }
  0x8e   : > { %v304_v45 = vmul.f32 %v270_v42, %v718_v37  ;;  %v305_v46 = vmul.f32 %v270_v42, %v721_v38  ;;  %v308_v57 = vmul.f32 %v280_v41, %v734_v47  ;;  %v309_v58 = vmul.f32 %v280_v41, %v737_v48 }
  0x90   : > { %v318_v51 = vadd.f32 %v304_v45, %v302_v43  ;;  %v331_v52 = vadd.f32 %v305_v46, %v303_v44 }
  0x91   : > { %v290_v53 = vpop.permute.xlu1 %289  ;;  %v285_v54 = vpop.permute.xlu0 %284 }
  0x92   : > { %v319_v59 = vadd.f32 %v318_v51, %v306_v49  ;;  %v332_v60 = vadd.f32 %v331_v52, %v307_v50  ;;  %v310_v63 = vmul.f32 %v285_v54, %v742_v55  ;;  %v311_v0 = vmul.f32 %v285_v54, %v745_v56 }
  0x93   : > { %v312_v6 = vmul.f32 %v290_v53, %v750_v61  ;;  %v313_v7 = vmul.f32 %v290_v53, %v753_v62 }
  0x94   : > { %v320_v1 = vadd.f32 %v319_v59, %v308_v57  ;;  %v333_v2 = vadd.f32 %v332_v60, %v309_v58 }
  0x95   : > { %v295_v3 = vpop.permute.xlu0 %294  ;;  %v300_v10 = vpop.permute.xlu1 %299 }
  0x96   : > { %v321_v8 = vadd.f32 %v320_v1, %v310_v63  ;;  %v334_v9 = vadd.f32 %v333_v2, %v311_v0  ;;  %v314_v13 = vmul.f32 %v295_v3, %v758_v4  ;;  %v315_v14 = vmul.f32 %v295_v3, %v761_v5 }
  0x97   : > { %v316_v17 = vmul.f32 %v300_v10, %v766_v11  ;;  %v317_v18 = vmul.f32 %v300_v10, %v769_v12 }
  0x98   : > { %v322_v15 = vadd.f32 %v321_v8, %v312_v6  ;;  %v335_v16 = vadd.f32 %v334_v9, %v313_v7 }
  0x99   : > { %v380_v51 = vpop.permute.xlu1 %379  ;;  %v375_v52 = vpop.permute.xlu0 %374 }
  0x9a   : > { %v323_v19 = vadd.f32 %v322_v15, %v314_v13  ;;  %v336_v20 = vadd.f32 %v335_v16, %v315_v14 }
  0x9c   : > { %v324_v21 = vadd.f32 %v323_v19, %v316_v17  ;;  %v337_v22 = vadd.f32 %v336_v20, %v317_v18 }
  0x9d   : > { %v390_v53 = vpop.permute.xlu1 %389  ;;  %v385_v54 = vpop.permute.xlu0 %384 }
  0x9e   : > { %v325_v23 = vrot.slane %v324_v21, 4  ;;  %v338_v24 = vrot.slane %v337_v22, 4 }
  0xa0   : > { %v326_v25 = vadd.f32 %v325_v23, %v324_v21  ;;  %v339_v26 = vadd.f32 %v338_v24, %v337_v22 }
  0xa1   : > { %v400_v60 = vpop.permute.xlu1 %399  ;;  %v395_v63 = vpop.permute.xlu0 %394 }
  0xa2   : > { %v327_v27 = vrot.slane %v326_v25, 2  ;;  %v340_v28 = vrot.slane %v339_v26, 2 }
  0xa4   : > { %v328_v29 = vadd.f32 %v327_v27, %v326_v25  ;;  %v341_v30 = vadd.f32 %v340_v28, %v339_v26 }
  0xa5   : > { %v405_v22 = vpop.permute.xlu0 %404 }
  0xa6   : > { %v329_v31 = vrot.slane %v328_v29, 1  ;;  %v342_v32 = vrot.slane %v341_v30, 1 }
  0xa8   : > { %v330_v33 = vadd.f32 %v329_v31, %v328_v29  ;;  %v343_v34 = vadd.f32 %v342_v32, %v341_v30 }
  0xaa   : > { %v344_v41 = vsub.f32 0.0, %v330_v33  ;;  %v345_v42 = vsub.f32 0.0, %v343_v34 }
  0xac   : > { %v346_v43 = vmul.f32 1.442695, %v344_v41  ;;  %v348_v44 = vmul.f32 1.442695, %v345_v42 }
  0xae   : > { %602 = vpow2.f32 %v346_v43 }
  0xaf   : > { %604 = vpow2.f32 %v348_v44 }
  0xbb   : > { %v603_v45 = vpop.eup %602 }
  0xbc   : > { %v605_v46 = vpop.eup %604  ;;  %v350_v49 = vadd.f32 1.0, %v603_v45 }
  0xbd   : > { %v351_v50 = vadd.f32 1.0, %v605_v46 }
  0xbe   : > { %606 = vrcp.f32 %v350_v49 }
  0xbf   : > { %608 = vrcp.f32 %v351_v50 }
  0xcb   : > { %v607_v57 = vpop.eup %606 }
  0xcc   : > { %v609_v58 = vpop.eup %608  ;;  %v370_v59 = vmul.f32 0.5, %v607_v57 }
  0xcd   : > { %v371_v0 = vmul.f32 0.5, %v609_v58 }
  0xce   : > { %v414_v1 = vadd.f32 %v380_v51, %v370_v59  ;;  %v412_v2 = vadd.f32 %v375_v52, %v370_v59  ;;  %v418_v3 = vadd.f32 %v390_v53, %v370_v59  ;;  %v416_v6 = vadd.f32 %v385_v54, %v370_v59 }
  0xcf   : > { %v415_v7 = vadd.f32 %v380_v51, %v371_v0  ;;  %v413_v8 = vadd.f32 %v375_v52, %v371_v0  ;;  %v419_v9 = vadd.f32 %v390_v53, %v371_v0  ;;  %v417_v10 = vadd.f32 %v385_v54, %v371_v0 }
  0xd0   : > { %v430_v13 = vmul.f32 %v414_v1, %v718_v37  ;;  %v428_v14 = vmul.f32 %v412_v2, %v712_v35  ;;  %v434_v15 = vmul.f32 %v418_v3, %v734_v47  ;;  %v432_v16 = vmul.f32 %v416_v6, %v724_v39  ;;  %v410_v39 = vpop.permute.xlu1 %409 }
  0xd1   : > { %v431_v17 = vmul.f32 %v415_v7, %v721_v38  ;;  %v429_v18 = vmul.f32 %v413_v8, %v715_v36  ;;  %v435_v19 = vmul.f32 %v419_v9, %v737_v48  ;;  %v433_v20 = vmul.f32 %v417_v10, %v727_v40 }
  0xd2   : > { %446 = vst [vmem:[%s780_s19 + $0x10] sm:$0xff] %v430_v13  ;;  %444 = vst [vmem:[%s780_s19] sm:$0xff] %v428_v14  ;;  %v422_v35 = vadd.f32 %v400_v60, %v370_v59  ;;  %v423_v37 = vadd.f32 %v400_v60, %v371_v0  ;;  %v420_v47 = vadd.f32 %v395_v63, %v370_v59 }
  0xd3   : > { %450 = vst [vmem:[%s780_s19 + $0x30] sm:$0xff] %v434_v15  ;;  %448 = vst [vmem:[%s780_s19 + $0x20] sm:$0xff] %v432_v16  ;;  %v421_v21 = vadd.f32 %v395_v63, %v371_v0  ;;  %v426_v36 = vadd.f32 %v410_v39, %v370_v59  ;;  %v427_v38 = vadd.f32 %v410_v39, %v371_v0 }
  0xd4   : > { %447 = vst [vmem:[%s780_s19 + $0x18] sm:$0xff] %v431_v17  ;;  %445 = vst [vmem:[%s780_s19 + $0x8] sm:$0xff] %v429_v18  ;;  %v424_v40 = vadd.f32 %v405_v22, %v370_v59  ;;  %v425_v48 = vadd.f32 %v405_v22, %v371_v0  ;;  %v438_v23 = vmul.f32 %v422_v35, %v750_v61 }
  0xd5   : > { %451 = vst [vmem:[%s780_s19 + $0x38] sm:$0xff] %v435_v19  ;;  %449 = vst [vmem:[%s780_s19 + $0x28] sm:$0xff] %v433_v20  ;;  %v439_v24 = vmul.f32 %v423_v37, %v753_v62  ;;  %v436_v25 = vmul.f32 %v420_v47, %v742_v55  ;;  %v437_v26 = vmul.f32 %v421_v21, %v745_v56 }
  0xd6   : > { %v442_v27 = vmul.f32 %v426_v36, %v766_v11  ;;  %v443_v28 = vmul.f32 %v427_v38, %v769_v12  ;;  %v440_v29 = vmul.f32 %v424_v40, %v758_v4  ;;  %v441_v30 = vmul.f32 %v425_v48, %v761_v5  ;;  %454 = vst [vmem:[%s780_s19 + $0x50] sm:$0xff] %v438_v23 }
  0xd7   : > { %455 = vst [vmem:[%s780_s19 + $0x58] sm:$0xff] %v439_v24  ;;  %452 = vst [vmem:[%s780_s19 + $0x40] sm:$0xff] %v436_v25 }
  0xd8   : > { %453 = vst [vmem:[%s780_s19 + $0x48] sm:$0xff] %v437_v26  ;;  %458 = vst [vmem:[%s780_s19 + $0x70] sm:$0xff] %v442_v27 }
  0xd9   : > { %459 = vst [vmem:[%s780_s19 + $0x78] sm:$0xff] %v443_v28  ;;  %456 = vst [vmem:[%s780_s19 + $0x60] sm:$0xff] %v440_v29 }
  0xda   : > { %457 = vst [vmem:[%s780_s19 + $0x68] sm:$0xff] %v441_v30 }
  0xdb PF: > { %s13_s14 = sadd.s32 1, %s632_s14   ;;  %s827_s12 = smov %s628_s13 }
  0xdc   : > { %p10_p5 = scmp.ge.s32.totalorder %s13_s14, 4   ;;  %s828_s13 = smov %s830_s15 }
  0xde   :  { %12 = sbr.rel (!%p10_p5) target bundleno = 2 (0x2), region = 65 }

</bundles_post_ra>
